<compile_context>
chip_gen: v6e
topology: v6e:2x2x1
jax: 0.10.0
libtpu: 0.0.40
codegen_flags: <defaults>
</compile_context>

<pallas_src>
import functools
import math

import jax
import jax.numpy as jnp
from jax.experimental import pallas as pl
from jax.experimental.pallas import tpu as pltpu


def _jde_kernel(x_ref, avec_ref, io_ref, *, no, nx, stride):
    # x_ref   : (1, na, L) raw conv outputs, channel-last flat; lane q <-> (t, c) = (q//no, q%no)
    # avec_ref: (na, 2)    anchor_vec = anchors / stride
    # io_ref  : (1, na, L) decoded detections in the same flat channel-last layout
    x = x_ref[...].astype(jnp.float32)                       # (1, na, L)
    L = x_ref.shape[-1]

    # Per-lane (spatial, channel) decode.  L % no == 0, so the channel pattern is
    # block-local; all divisions carry a +0.5 guard and exact-integer operands.
    lane = jax.lax.broadcasted_iota(jnp.int32, (1, 1, L), 2).astype(jnp.float32)
    c_div = jnp.floor((lane + 0.5) / no)                     # lane // no   (exact)
    c = lane - c_div * no                                    # channel id   (exact)
    t = c_div + (pl.program_id(1) * (L // no)).astype(jnp.float32)   # flat spatial idx
    row = jnp.floor((t + 0.5) / nx)                          # y = t // nx  (exact)
    col = t - row * nx                                       # x = t %  nx  (exact)
    offs = jnp.where(c < 0.5, col, row)                      # x-offset on c==0, y on c==1

    avec = avec_ref[...]                                     # (na, 2)
    anc = jnp.where(c < 2.5, avec[:, 0:1], avec[:, 1:2])     # (1, na, L): w on c==2, h on c==3

    # Box branch (results only kept on c < 4 lanes; sigmoid rides in EUP slack).
    s2 = jax.nn.sigmoid(x) * 2.0
    xy = (s2 - 0.5 + offs) * stride
    wh = s2 * s2 * anc * stride

    # Class/conf branch: softmax across the anchor (sublane) axis, per lane (c >= 4).
    m = jnp.max(x, axis=1, keepdims=True)
    e = jnp.exp(x - m)
    sm = e / jnp.sum(e, axis=1, keepdims=True)

    io_ref[...] = jnp.where(c < 1.5, xy,
                            jnp.where(c < 3.5, wh, sm)).astype(io_ref.dtype)


def _choose_lane_block(F, na, no):
    """Flat (spatial*channel) lane block: multiple of 128 and of `no` (block-local
    index decode), ~<=256 KiB of input per block (safe on every generation's scoped
    VMEM with temporaries), >= 2 spatial steps when the problem allows (feeds both
    v7x TCs), and a divisor of F when cheaply possible (no padded final tile)."""
    unit = (128 * no) // math.gcd(128, no)                   # lcm(128, no)
    if F <= max(512, unit) or F < 2 * unit:
        return F                                             # single spatial step
    cap = max(unit, ((256 * 1024) // (na * 4)) // unit * unit)
    target = min(cap, max(unit, (F // (2 * unit)) * unit))   # aim for >= 2 steps
    L = target
    while L >= unit:                                         # prefer an exact divisor of F
        if F % L == 0:
            return L
        L -= unit
    return target


def jde_layer_forward(p_nchw, anchors, nc, stride):
    """Returns (io.reshape(bs, -1, no), p) exactly like JDELayer.forward (eval mode)."""
    bs, ch, ny, nx = p_nchw.shape
    na = anchors.shape[0]
    no = nc + 5
    assert ch == na * no, "channel dim must equal na * (nc + 5)"
    S = ny * nx
    F = S * no
    assert F < (1 << 24), "flat spatial*channel width must stay below 2^24 for exact f32 decode"

    # The single relayout pass over the big tensor: NCHW conv output -> channel-last.
    # This IS the module's second return value `p`; its flat view feeds the kernel.
    p5 = jnp.transpose(p_nchw.reshape(bs, na, no, ny, nx),
                       (0, 1, 3, 4, 2)).astype(jnp.float32)          # (bs, na, ny, nx, no)
    x_flat = p5.reshape(bs, na, F)                                   # view-only

    anchor_vec = anchors.astype(jnp.float32) / float(stride)          # (na, 2)

    L = _choose_lane_block(F, na, no)
    grid = (bs, pl.cdiv(F, L))

    kernel = functools.partial(_jde_kernel, no=no, nx=nx, stride=float(stride))
    io_flat = pl.pallas_call(
        kernel,
        out_shape=jax.ShapeDtypeStruct((bs, na, F), jnp.float32),
        grid=grid,
        in_specs=[
            pl.BlockSpec((1, na, L), lambda b, s: (b, 0, s)),
            pl.BlockSpec((na, 2), lambda b, s: (0, 0)),
        ],
        out_specs=pl.BlockSpec((1, na, L), lambda b, s: (b, 0, s)),
        compiler_params=pltpu.CompilerParams(
            dimension_semantics=("parallel", "parallel")),
    )(x_flat, anchor_vec)

    io = io_flat.reshape(bs, na * S, no)                             # view-only
    return io, p5


def jde_layer_reference(p_nchw, anchors, nc, stride):
    """Pure-JAX reference mirroring the PyTorch eval forward."""
    bs, ch, ny, nx = p_nchw.shape
    na = anchors.shape[0]
    no = nc + 5
    p5 = jnp.transpose(p_nchw.reshape(bs, na, no, ny, nx),
                       (0, 1, 3, 4, 2)).astype(jnp.float32)
    yv, xv = jnp.meshgrid(jnp.arange(ny, dtype=jnp.float32),
                          jnp.arange(nx, dtype=jnp.float32), indexing="ij")
    grid = jnp.stack((xv, yv), -1).reshape(1, 1, ny, nx, 2)
    anchor_wh = (anchors.astype(jnp.float32) / float(stride)).reshape(1, na, 1, 1, 2)
    xy = (jax.nn.sigmoid(p5[..., :2]) * 2.0 - 0.5 + grid) * float(stride)
    wh = ((jax.nn.sigmoid(p5[..., 2:4]) * 2) ** 2 * anchor_wh) * float(stride)
    sm = jax.nn.softmax(p5[..., 4:], axis=1)   # legacy implicit dim=1 for 5-D input
    io = jnp.concatenate([xy, wh, sm], axis=-1)
    return io.reshape(bs, -1, no), p5


if __name__ == "__main__":
    # Deterministic "module init": anchors / nc / stride as JDELayer.__init__ would hold them.
    anchors = jnp.array([[10.0, 13.0], [16.0, 30.0], [33.0, 23.0]], dtype=jnp.float32)
    nc = 3           # number of classes
    stride = 8
    na = anchors.shape[0]
    no = nc + 5      # = 8
    bs, ny, nx = 2, 16, 16

    key = jax.random.PRNGKey(0)
    p_nchw = jax.random.normal(key, (bs, na * no, ny, nx), dtype=jnp.float32)

    io, p5 = jde_layer_forward(p_nchw, anchors, nc, stride)
    io = jax.block_until_ready(io)
    p5 = jax.block_until_ready(p5)

    io_ref, p5_ref = jde_layer_reference(p_nchw, anchors, nc, stride)

    assert io.shape == (bs, na * ny * nx, no)
    assert p5.shape == (bs, na, ny, nx, no)
    assert jnp.allclose(io, io_ref, rtol=1e-5, atol=1e-5)
    assert jnp.allclose(p5, p5_ref, rtol=1e-6, atol=1e-6)

    print("KERNEL_OK")
</pallas_src>

<mosaic_0001>
module attributes {stable_mosaic.version = 11 : i64} {
  func.func @_jde_kernel(%arg0: i32, %arg1: i32, %arg2: memref<1x3x1024xf32, #tpu.memory_space<vmem>>, %arg3: memref<3x2xf32, #tpu.memory_space<vmem>>, %arg4: memref<1x3x1024xf32, #tpu.memory_space<vmem>>) attributes {dimension_semantics = [#tpu.dimension_semantics<parallel>, #tpu.dimension_semantics<parallel>], iteration_bounds = array<i64: 2, 2>, scalar_prefetch = 0 : i64, scratch_operands = 0 : i64, tpu.core_type = #tpu.core_type<tc>, window_params = [{transform_indices = @transform_0, window_bounds = array<i64: 1, 3, 1024>}, {pipeline_mode = #tpu.pipeline_mode<synchronous>, transform_indices = @transform_1, window_bounds = array<i64: 3, 2>}, {transform_indices = @transform_2, window_bounds = array<i64: 1, 3, 1024>}]} {
    %c0 = arith.constant 0 : index
    %c0_0 = arith.constant 0 : index
    %c0_1 = arith.constant 0 : index
    %0 = vector.load %arg2[%c0, %c0_0, %c0_1] : memref<1x3x1024xf32, #tpu.memory_space<vmem>>, vector<1x3x1024xf32>
    %1 = tpu.iota {dimensions = array<i32: 2>} : vector<1x1x1024xi32>
    %2 = arith.sitofp %1 : vector<1x1x1024xi32> to vector<1x1x1024xf32>
    %cst = arith.constant 5.000000e-01 : f32
    %3 = vector.broadcast %cst : f32 to vector<1x1x1024xf32>
    %4 = arith.addf %2, %3 : vector<1x1x1024xf32>
    %cst_2 = arith.constant 8.000000e+00 : f32
    %5 = vector.broadcast %cst_2 : f32 to vector<1x1x1024xf32>
    %6 = arith.divf %4, %5 : vector<1x1x1024xf32>
    %7 = math.floor %6 : vector<1x1x1024xf32>
    %cst_3 = arith.constant 8.000000e+00 : f32
    %8 = vector.broadcast %cst_3 : f32 to vector<1x1x1024xf32>
    %9 = arith.mulf %7, %8 : vector<1x1x1024xf32>
    %10 = arith.subf %2, %9 : vector<1x1x1024xf32>
    %c128_i32 = arith.constant 128 : i32
    %11 = arith.muli %arg1, %c128_i32 : i32
    %12 = arith.sitofp %11 : i32 to f32
    %13 = vector.broadcast %12 : f32 to vector<1x1x1024xf32>
    %14 = arith.addf %7, %13 : vector<1x1x1024xf32>
    %cst_4 = arith.constant 5.000000e-01 : f32
    %15 = vector.broadcast %cst_4 : f32 to vector<1x1x1024xf32>
    %16 = arith.addf %14, %15 : vector<1x1x1024xf32>
    %cst_5 = arith.constant 1.600000e+01 : f32
    %17 = vector.broadcast %cst_5 : f32 to vector<1x1x1024xf32>
    %18 = arith.divf %16, %17 : vector<1x1x1024xf32>
    %19 = math.floor %18 : vector<1x1x1024xf32>
    %cst_6 = arith.constant 1.600000e+01 : f32
    %20 = vector.broadcast %cst_6 : f32 to vector<1x1x1024xf32>
    %21 = arith.mulf %19, %20 : vector<1x1x1024xf32>
    %22 = arith.subf %14, %21 : vector<1x1x1024xf32>
    %cst_7 = arith.constant 5.000000e-01 : f32
    %23 = vector.broadcast %cst_7 : f32 to vector<1x1x1024xf32>
    %24 = arith.cmpf olt, %10, %23 : vector<1x1x1024xf32>
    %25 = arith.select %24, %22, %19 : vector<1x1x1024xi1>, vector<1x1x1024xf32>
    %c0_8 = arith.constant 0 : index
    %c0_9 = arith.constant 0 : index
    %26 = vector.load %arg3[%c0_8, %c0_9] : memref<3x2xf32, #tpu.memory_space<vmem>>, vector<3x2xf32>
    %cst_10 = arith.constant 2.500000e+00 : f32
    %27 = vector.broadcast %cst_10 : f32 to vector<1x1x1024xf32>
    %28 = arith.cmpf olt, %10, %27 : vector<1x1x1024xf32>
    %29 = vector.extract_strided_slice %26 {offsets = [0, 0], sizes = [3, 1], strides = [1, 1]} : vector<3x2xf32> to vector<3x1xf32>
    %30 = vector.extract_strided_slice %26 {offsets = [0, 1], sizes = [3, 1], strides = [1, 1]} : vector<3x2xf32> to vector<3x1xf32>
    %31 = vector.shape_cast %28 : vector<1x1x1024xi1> to vector<1x1x1024xi1>
    %32 = vector.broadcast %31 : vector<1x1x1024xi1> to vector<1x3x1024xi1>
    %33 = vector.shape_cast %29 : vector<3x1xf32> to vector<1x3x1xf32>
    %34 = vector.broadcast %33 : vector<1x3x1xf32> to vector<1x3x1024xf32>
    %35 = vector.shape_cast %30 : vector<3x1xf32> to vector<1x3x1xf32>
    %36 = vector.broadcast %35 : vector<1x3x1xf32> to vector<1x3x1024xf32>
    %37 = arith.select %32, %34, %36 : vector<1x3x1024xi1>, vector<1x3x1024xf32>
    %38 = arith.negf %0 : vector<1x3x1024xf32>
    %39 = math.exp %38 : vector<1x3x1024xf32>
    %cst_11 = arith.constant 1.000000e+00 : f32
    %40 = vector.broadcast %cst_11 : f32 to vector<1x3x1024xf32>
    %41 = arith.addf %40, %39 : vector<1x3x1024xf32>
    %42 = arith.divf %40, %41 : vector<1x3x1024xf32>
    %cst_12 = arith.constant 2.000000e+00 : f32
    %43 = vector.broadcast %cst_12 : f32 to vector<1x3x1024xf32>
    %44 = arith.mulf %42, %43 : vector<1x3x1024xf32>
    %cst_13 = arith.constant 5.000000e-01 : f32
    %45 = vector.broadcast %cst_13 : f32 to vector<1x3x1024xf32>
    %46 = arith.subf %44, %45 : vector<1x3x1024xf32>
    %47 = vector.broadcast %25 : vector<1x1x1024xf32> to vector<1x3x1024xf32>
    %48 = arith.addf %46, %47 : vector<1x3x1024xf32>
    %cst_14 = arith.constant 8.000000e+00 : f32
    %49 = vector.broadcast %cst_14 : f32 to vector<1x3x1024xf32>
    %50 = arith.mulf %48, %49 : vector<1x3x1024xf32>
    %51 = arith.mulf %44, %44 : vector<1x3x1024xf32>
    %52 = arith.mulf %51, %37 : vector<1x3x1024xf32>
    %cst_15 = arith.constant 8.000000e+00 : f32
    %53 = vector.broadcast %cst_15 : f32 to vector<1x3x1024xf32>
    %54 = arith.mulf %52, %53 : vector<1x3x1024xf32>
    %cst_16 = arith.constant dense<0xFF800000> : vector<1x1024xf32>
    %55 = vector.multi_reduction <maximumf>, %0, %cst_16 [1] : vector<1x3x1024xf32> to vector<1x1024xf32>
    %56 = vector.shape_cast %55 : vector<1x1024xf32> to vector<1x1x1024xf32>
    %57 = vector.broadcast %56 : vector<1x1x1024xf32> to vector<1x3x1024xf32>
    %58 = arith.subf %0, %57 : vector<1x3x1024xf32>
    %59 = math.exp %58 : vector<1x3x1024xf32>
    %cst_17 = arith.constant dense<0.000000e+00> : vector<1x1024xf32>
    %60 = vector.multi_reduction <add>, %59, %cst_17 [1] : vector<1x3x1024xf32> to vector<1x1024xf32>
    %61 = vector.shape_cast %60 : vector<1x1024xf32> to vector<1x1x1024xf32>
    %62 = vector.broadcast %61 : vector<1x1x1024xf32> to vector<1x3x1024xf32>
    %63 = arith.divf %59, %62 : vector<1x3x1024xf32>
    %cst_18 = arith.constant 1.500000e+00 : f32
    %64 = vector.broadcast %cst_18 : f32 to vector<1x1x1024xf32>
    %65 = arith.cmpf olt, %10, %64 : vector<1x1x1024xf32>
    %cst_19 = arith.constant 3.500000e+00 : f32
    %66 = vector.broadcast %cst_19 : f32 to vector<1x1x1024xf32>
    %67 = arith.cmpf olt, %10, %66 : vector<1x1x1024xf32>
    %68 = vector.shape_cast %67 : vector<1x1x1024xi1> to vector<1x1x1024xi1>
    %69 = vector.broadcast %68 : vector<1x1x1024xi1> to vector<1x3x1024xi1>
    %70 = arith.select %69, %54, %63 : vector<1x3x1024xi1>, vector<1x3x1024xf32>
    %71 = vector.shape_cast %65 : vector<1x1x1024xi1> to vector<1x1x1024xi1>
    %72 = vector.broadcast %71 : vector<1x1x1024xi1> to vector<1x3x1024xi1>
    %73 = arith.select %72, %50, %70 : vector<1x3x1024xi1>, vector<1x3x1024xf32>
    %c0_20 = arith.constant 0 : index
    %c0_21 = arith.constant 0 : index
    %c0_22 = arith.constant 0 : index
    %74 = vector.load %arg4[%c0_20, %c0_21, %c0_22] : memref<1x3x1024xf32, #tpu.memory_space<vmem>>, vector<1x3x1024xf32>
    tpu.vector_store %arg4[%c0_20, %c0_21, %c0_22], %73 {strides = array<i32>} : memref<1x3x1024xf32, #tpu.memory_space<vmem>>, vector<1x3x1024xf32>,
    return
  }
  func.func @transform_0(%arg0: i32, %arg1: i32) -> (i32, i32, i32) {
    %c0_i32 = arith.constant 0 : i32
    %c0_i32_0 = arith.constant 0 : i32
    return %arg0, %c0_i32, %arg1 : i32, i32, i32
  }
  func.func @transform_1(%arg0: i32, %arg1: i32) -> (i32, i32) {
    %c0_i32 = arith.constant 0 : i32
    %c0_i32_0 = arith.constant 0 : i32
    %c0_i32_1 = arith.constant 0 : i32
    return %c0_i32, %c0_i32_0 : i32, i32
  }
  func.func @transform_2(%arg0: i32, %arg1: i32) -> (i32, i32, i32) {
    %c0_i32 = arith.constant 0 : i32
    %c0_i32_0 = arith.constant 0 : i32
    return %arg0, %c0_i32, %arg1 : i32, i32, i32
  }
}

</mosaic_0001>

<bundles_post_ra>
// kernel: tpu_custom_call.1
= control target key start
LH: loop header
LB: loop body
LE: loop exit
PB: predicated region body
PF: predicated region fallthrough
CT: control target
= control target key end

     0   :  { %s997_s9 = smov 0   ;;  %s999_s10 = smov 0   ;;  %s1386_s0 = inlined_call_operand.vmem [shape: f32[2,3,2048], index: 0, kind: input, shape index: {}]   ;;  %s1387_s1 = inlined_call_operand.vmem [shape: f32[3,2], index: 1, kind: input, shape index: {}]   ;;  %s1388_s2 = inlined_call_operand.vmem [shape: f32[2,3,2048], index: 2, kind: output, shape index: {}]  }
   0x1   :  { %s1001_s11 = smov 0   ;;  %s1003_s12 = smov 0  }
   0x2   :  { %s1005_s13 = smov 0  }
   0x3 LB: > { %s21_s14 = sadd.s32 1, %s970_s11  ;;  %s24_s15 = sadd.s32 1, %s974_s12  ;;  %s978_s13 = sphi %s1005_s13, %s12_s13   ;;  %s974_s12 = sphi %s1003_s12, %s1423_s12   ;;  %s970_s11 = sphi %s1001_s11, %s1422_s11   ;;  %s966_s10 = sphi %s999_s10, %s1421_s10   ;;  %s962_s9 = sphi %s997_s9, %s1420_s9  }
   0x4   : > { %p22_p0 = scmp.ge.s32.totalorder %s21_s14, 2  ;;  %p842_p1 = scmp.ge.s32.totalorder %s978_s13, 1 }
   0x5   : > { %p133_p2 = scmp.lt.s32.totalorder %s978_s13, 5 }
   0x6   : > { %s1425_s14 = smov (%p22_p0, %s21_s14), 0  ;;  %s1427_s15 = smov (!%p22_p0, %s24_s15), %s974_s12 }
   0x7   : > { %p134_p3 = pnand %p842_p1, %p133_p2  ;;  %p26_p4 = scmp.ge.s32.totalorder %s1427_s15, 2 }
   0x9   : > { %s1429_s15 = smov (%p26_p4, %s1427_s15), 0  ;;  %137 = sbr.rel (%p134_p3) target bundleno = 163 (0xa3), region = 28 }
   0xe   : > { %v313_v0 = vld [vmem:[%s1387_s1] sm:$0x7]  ;;  %v980_v1 = vmov 0   ;;  %v981_v2 = vmov 1   ;;  %s843_s18 = sshll.u32 %s962_s9, 3  ;;  %p164_p5 = scmp.lt.s32.totalorder %s966_s10, 1 }
   0xf   : > { %902 = vset.pattern.permute.xlu0 %v980_v1  ;;  %p166_p6 = scmp.lt.s32.totalorder %s843_s18, 15  ;;  %vm451_vm0 = vcmask 1042432   ;;  %s849_s25 = sshll.u32 %s962_s9, 7 }
  0x10   : > { %340 = vperm.xlu0 %902, %v313_v0   ;;  %s1431_s10 = smov (!%p164_p5, %s966_s10), 1  ;;  %s246_s26 = scvt.s32.f32 %s849_s25 }
  0x11   : > { %s1433_s18 = smov (!%p166_p6, %s843_s18), 15  ;;  %s844_s19 = sshll.u32 %s1431_s10, 4 }
  0x12   : > { %s1033_s20 = sadd.s32 %s844_s19, %s1433_s18 }
  0x13   : > { %s845_s21 = sshll.u32 %s1033_s20, 2 }
  0x14   : > { %903 = vset.pattern.permute.xlu0 %v981_v2  ;;  %s171_s24 = scalar_lea.vmem %s1386_s0, %s845_s21  ;;  %v187_v2 = vlaneseq  ;;  %s181_s29 = scalar_lea.vmem %s1388_s2, %s845_s21 }
  0x15   : > { %344 = vperm.xlu0 %903, %v313_v0   ;;  %v1041_v3 = vld [vmem:[%s171_s24] sm:$0x77]  ;;  %v1043_v4 = vld [vmem:[%s171_s24 + $0x8] sm:$0x77]  ;;  %v1045_v5 = vld [vmem:[%s171_s24 + $0x10] sm:$0x77] }
  0x16   : > { %v1047_v6 = vld [vmem:[%s171_s24 + $0x18] sm:$0x77]  ;;  %v443_v7 = vcombine.high %v1041_v3, %v1041_v3  ;;  %v444_v8 = vcombine.high %v1043_v4, %v1043_v4  ;;  %v445_v9 = vcombine.high %v1045_v5, %v1045_v5  ;;  %v452_v11 = vsel %vm451_vm0, %v1041_v3, -inf }
  0x17   : > { %v446_v10 = vcombine.high %v1047_v6, %v1047_v6  ;;  %v466_v12 = vsel %vm451_vm0, %v1043_v4, -inf  ;;  %v453_v13 = vrot.slane %v452_v11, 4  ;;  %v480_v18 = vsel %vm451_vm0, %v1045_v5, -inf }
  0x18   : > { %v459_v14 = vsel %vm451_vm0, %v443_v7, -inf  ;;  %v467_v15 = vrot.slane %v466_v12, 4  ;;  %v473_v17 = vsel %vm451_vm0, %v444_v8, -inf  ;;  %v487_v19 = vsel %vm451_vm0, %v445_v9, -inf }
  0x19   : > { %v460_v16 = vrot.slane %v459_v14, 4  ;;  %v454_v20 = vmax.f32 %v452_v11, %v453_v13  ;;  %v474_v22 = vrot.slane %v473_v17, 4  ;;  %v481_v23 = vrot.slane %v480_v18, 4 }
  0x1a   : > { %v468_v21 = vmax.f32 %v466_v12, %v467_v15  ;;  %v488_v25 = vrot.slane %v487_v19, 4  ;;  %v494_v26 = vsel %vm451_vm0, %v1047_v6, -inf  ;;  %v501_v27 = vsel %vm451_vm0, %v446_v10, -inf }
  0x1b   : > { %v461_v24 = vmax.f32 %v459_v14, %v460_v16  ;;  %v455_v28 = vrot.slane %v454_v20, 2  ;;  %v475_v30 = vmax.f32 %v473_v17, %v474_v22  ;;  %v482_v31 = vmax.f32 %v480_v18, %v481_v23 }
  0x1c   : > { %v469_v29 = vrot.slane %v468_v21, 2  ;;  %v489_v33 = vmax.f32 %v487_v19, %v488_v25  ;;  %v495_v34 = vrot.slane %v494_v26, 4  ;;  %v502_v35 = vrot.slane %v501_v27, 4 }
  0x1d   : > { %v462_v32 = vrot.slane %v461_v24, 2  ;;  %v456_v36 = vmax.f32 %v454_v20, %v455_v28  ;;  %v476_v38 = vrot.slane %v475_v30, 2  ;;  %v483_v39 = vrot.slane %v482_v31, 2 }
  0x1e   : > { %v470_v37 = vmax.f32 %v468_v21, %v469_v29  ;;  %v490_v41 = vrot.slane %v489_v33, 2  ;;  %v496_v42 = vmax.f32 %v494_v26, %v495_v34  ;;  %v503_v43 = vmax.f32 %v501_v27, %v502_v35 }
  0x1f   : > { %v463_v40 = vmax.f32 %v461_v24, %v462_v32  ;;  %v457_v44 = vrot.slane %v456_v36, 1  ;;  %v477_v46 = vmax.f32 %v475_v30, %v476_v38  ;;  %v484_v47 = vmax.f32 %v482_v31, %v483_v39 }
  0x20   : > { %v471_v45 = vrot.slane %v470_v37, 1  ;;  %v491_v49 = vmax.f32 %v489_v33, %v490_v41  ;;  %v497_v50 = vrot.slane %v496_v42, 2  ;;  %v504_v51 = vrot.slane %v503_v43, 2 }
  0x21   : > { %v464_v48 = vrot.slane %v463_v40, 1  ;;  %v458_v52 = vmax.f32 %v456_v36, %v457_v44  ;;  %v478_v53 = vrot.slane %v477_v46, 1  ;;  %v485_v54 = vrot.slane %v484_v47, 1 }
  0x22   : > { %v472_v56 = vmax.f32 %v470_v37, %v471_v45  ;;  %v492_v57 = vrot.slane %v491_v49, 1  ;;  %v498_v58 = vmax.f32 %v496_v42, %v497_v50  ;;  %v505_v61 = vmax.f32 %v503_v43, %v504_v51 }
  0x23   : > { %v465_v55 = vmax.f32 %v463_v40, %v464_v48  ;;  %v479_v59 = vmax.f32 %v477_v46, %v478_v53  ;;  %v486_v60 = vmax.f32 %v484_v47, %v485_v54  ;;  %v1072_v16 = vand.u32 127, %v187_v2 }
  0x24   : > { %v493_v62 = vmax.f32 %v491_v49, %v492_v57  ;;  %v499_v63 = vrot.slane %v498_v58, 1  ;;  %v506_v0 = vrot.slane %v505_v61, 1  ;;  %v1129_v49 = vstv %s246_s26 }
  0x25   : > { %v516_v1 = vcombine.low %v458_v52, %v465_v55  ;;  %v517_v8 = vcombine.low %v472_v56, %v479_v59  ;;  %v1076_v21 = vadd.s32 128, %v1072_v16  ;;  %v1079_v22 = vadd.s32 256, %v1072_v16 }
  0x26   : > { %v500_v7 = vmax.f32 %v498_v58, %v499_v63  ;;  %v518_v9 = vcombine.low %v486_v60, %v493_v62  ;;  %v507_v10 = vmax.f32 %v505_v61, %v506_v0  ;;  %v1082_v23 = vadd.s32 384, %v1072_v16 }
  0x27   : > { %v524_v11 = vsub.f32 %v1041_v3, %v516_v1  ;;  %v525_v12 = vsub.f32 %v1043_v4, %v517_v8  ;;  %v1085_v24 = vadd.s32 512, %v1072_v16  ;;  %v1088_v25 = vadd.s32 640, %v1072_v16 }
  0x28   : > { %v526_v13 = vsub.f32 %v1045_v5, %v518_v9  ;;  %v519_v14 = vcombine.low %v500_v7, %v507_v10  ;;  %v1091_v26 = vadd.s32 768, %v1072_v16  ;;  %v1094_v27 = vadd.s32 896, %v1072_v16 }
  0x29   : > { %v528_v15 = vmul.f32 1.442695, %v524_v11  ;;  %v530_v17 = vmul.f32 1.442695, %v525_v12  ;;  %v1396_v28 = vcvt.s32.f32 %v1072_v16  ;;  %v1395_v29 = vcvt.s32.f32 %v1076_v21 }
  0x2a   : > { %v532_v18 = vmul.f32 1.442695, %v526_v13  ;;  %v527_v19 = vsub.f32 %v1047_v6, %v519_v14  ;;  %v1394_v30 = vcvt.s32.f32 %v1079_v22  ;;  %v1393_v31 = vcvt.s32.f32 %v1082_v23 }
  0x2b   : > { %908 = vpow2.f32 %v528_v15  ;;  %v1392_v32 = vcvt.s32.f32 %v1085_v24  ;;  %v1391_v33 = vcvt.s32.f32 %v1088_v25  ;;  %v1390_v34 = vcvt.s32.f32 %v1091_v26 }
  0x2c   : > { %910 = vpow2.f32 %v530_v17  ;;  %v534_v20 = vmul.f32 1.442695, %v527_v19  ;;  %v1389_v35 = vcvt.s32.f32 %v1094_v27  ;;  %v204_v36 = vadd.f32 0.5, %v1396_v28 }
  0x2d   : > { %912 = vpow2.f32 %v532_v18  ;;  %v205_v37 = vadd.f32 0.5, %v1395_v29  ;;  %v206_v38 = vadd.f32 0.5, %v1394_v30  ;;  %v207_v39 = vadd.f32 0.5, %v1393_v31 }
  0x2e   : > { %914 = vpow2.f32 %v534_v20  ;;  %v208_v41 = vadd.f32 0.5, %v1392_v32  ;;  %v209_v42 = vadd.f32 0.5, %v1391_v33  ;;  %v210_v44 = vadd.f32 0.5, %v1390_v34 }
  0x2f   : > { %v211_v45 = vadd.f32 0.5, %v1389_v35  ;;  %v1125_v46 = vmul.f32 0.125, %v204_v36  ;;  %v214_v48 = vmul.f32 0.125, %v205_v37  ;;  %v215_v51 = vmul.f32 0.125, %v206_v38 }
  0x30   : > { %v216_v52 = vmul.f32 0.125, %v207_v39  ;;  %v850_v53 = vmul.f32 -1.442695, %v1041_v3  ;;  %v217_v56 = vmul.f32 0.125, %v208_v41  ;;  %v218_v57 = vmul.f32 0.125, %v209_v42 }
  0x31   : > { %v851_v58 = vmul.f32 -1.442695, %v1043_v4  ;;  %v219_v60 = vmul.f32 0.125, %v210_v44  ;;  %v1141_v61 = vmul.f32 0.125, %v211_v45  ;;  %v221_v62 = vfloor.f32 %v1125_v46 }
  0x32   : > { %v222_v63 = vfloor.f32 %v214_v48  ;;  %v852_v0 = vmul.f32 -1.442695, %v1045_v5  ;;  %916 = vpow2.f32 %v850_v53  ;;  %v853_v4 = vmul.f32 -1.442695, %v1047_v6 }
  0x33   : > { %v223_v9 = vfloor.f32 %v215_v51  ;;  %918 = vpow2.f32 %v851_v58  ;;  %v224_v6 = vfloor.f32 %v216_v52  ;;  %v225_v18 = vfloor.f32 %v217_v56 }
  0x34   : > { %920 = vpow2.f32 %v852_v0  ;;  %v226_v36 = vfloor.f32 %v218_v57  ;;  %v227_v37 = vfloor.f32 %v219_v60  ;;  %v1397_v41 = vfloor.f32 %v1141_v61 }
  0x35   : > { %922 = vpow2.f32 %v853_v4  ;;  %v1161_v42 = vmul.f32 8.0, %v221_v62  ;;  %v1163_v46 = vmul.f32 8.0, %v222_v63  ;;  %v1165_v48 = vmul.f32 8.0, %v223_v9 }
  0x36   : > { %v1167_v52 = vmul.f32 8.0, %v224_v6  ;;  %v1169_v53 = vmul.f32 8.0, %v225_v18  ;;  %v1171_v57 = vmul.f32 8.0, %v226_v36  ;;  %v1173_v58 = vmul.f32 8.0, %v227_v37 }
  0x37   : > { %v1179_v0 = vadd.f32 %v1129_v49, %v222_v63  ;;  %v1182_v4 = vadd.f32 %v1129_v49, %v223_v9  ;;  %v1199_v9 = vadd.f32 %v1129_v49, %v1397_v41 }
  0x38   : > { %v1113_v40 = vpop.eup %908 }
  0x39   : > { %v1119_v43 = vpop.eup %910  ;;  %v540_v50 = vcombine.high %v1113_v40, %v1113_v40  ;;  %v548_v1 = vsel %vm451_vm0, %v1113_v40, 0.0 }
  0x3a   : > { %1401 = vst [vmem:[#allocation2_spill] sm:$0xff] %v1119_v43  ;;  %v1127_v47 = vpop.eup %912  ;;  %v541_v54 = vcombine.high %v1119_v43, %v1119_v43  ;;  %v562_v7 = vsel %vm451_vm0, %v1119_v43, 0.0  ;;  %v549_v11 = vrot.slane %v548_v1, 4 }
  0x3b   : > { %1402 = vst [vmem:[#allocation3_spill] sm:$0xff] %v1127_v47  ;;  %v1136_v55 = vpop.eup %914  ;;  %v542_v59 = vcombine.high %v1127_v47, %v1127_v47  ;;  %v555_v2 = vsel %vm451_vm0, %v540_v50, 0.0  ;;  %v576_v10 = vsel %vm451_vm0, %v1127_v47, 0.0  ;;  %v563_v15 = vrot.slane %v562_v7, 4 }
  0x3c   : > { %1403 = vst [vmem:[#allocation4_spill] sm:$0xff] %v1136_v55  ;;  %v543_v3 = vcombine.high %v1136_v55, %v1136_v55  ;;  %v569_v8 = vsel %vm451_vm0, %v541_v54, 0.0  ;;  %v556_v12 = vrot.slane %v555_v2, 4  ;;  %v590_v13 = vsel %vm451_vm0, %v1136_v55, 0.0 }
  0x3d   : > { %v583_v5 = vsel %vm451_vm0, %v542_v59, 0.0  ;;  %v570_v17 = vrot.slane %v569_v8, 4  ;;  %v577_v19 = vrot.slane %v576_v10, 4  ;;  %v591_v38 = vrot.slane %v590_v13, 4 }
  0x3e   : > { %v597_v14 = vsel %vm451_vm0, %v543_v3, 0.0  ;;  %v584_v20 = vrot.slane %v583_v5, 4  ;;  %v550_v44 = vadd.f32 %v549_v11, %v548_v1  ;;  %v557_v45 = vadd.f32 %v556_v12, %v555_v2 }
  0x3f   : > { %v598_v39 = vrot.slane %v597_v14, 4  ;;  %v564_v50 = vadd.f32 %v563_v15, %v562_v7  ;;  %v571_v51 = vadd.f32 %v570_v17, %v569_v8  ;;  %v578_v54 = vadd.f32 %v577_v19, %v576_v10  ;;  %v917_v63 = vpop.eup %916 }
  0x40   : > { %v585_v56 = vadd.f32 %v584_v20, %v583_v5  ;;  %v592_v59 = vadd.f32 %v591_v38, %v590_v13  ;;  %v1176_v3 = vadd.f32 %v1129_v49, %v221_v62  ;;  %v551_v1 = vrot.slane %v550_v44, 2  ;;  %v919_v15 = vpop.eup %918 }
  0x41   : > { %v599_v60 = vadd.f32 %v598_v39, %v597_v14  ;;  %v558_v2 = vrot.slane %v557_v45, 2  ;;  %v1185_v7 = vadd.f32 %v1129_v49, %v224_v6  ;;  %v565_v8 = vrot.slane %v564_v50, 2  ;;  %v921_v35 = vpop.eup %920 }
  0x42   : > { %v572_v10 = vrot.slane %v571_v51, 2  ;;  %v1188_v5 = vadd.f32 %v1129_v49, %v225_v18  ;;  %v1191_v11 = vadd.f32 %v1129_v49, %v226_v36  ;;  %v579_v62 = vrot.slane %v578_v54, 2  ;;  %v923_v31 = vpop.eup %922 }
  0x43   : > { %v586_v12 = vrot.slane %v585_v56, 2  ;;  %v1194_v13 = vadd.f32 %v1129_v49, %v227_v37  ;;  %v593_v14 = vrot.slane %v592_v59, 2  ;;  %v600_v6 = vrot.slane %v599_v60, 2 }
  0x44   : > { %v256_v17 = vadd.f32 0.5, %v1176_v3  ;;  %v257_v18 = vadd.f32 0.5, %v1179_v0  ;;  %v552_v19 = vadd.f32 %v551_v1, %v550_v44  ;;  %v559_v20 = vadd.f32 %v558_v2, %v557_v45 }
  0x45   : > { %v258_v36 = vadd.f32 0.5, %v1182_v4  ;;  %v259_v38 = vadd.f32 0.5, %v1185_v7  ;;  %v566_v37 = vadd.f32 %v565_v8, %v564_v50  ;;  %v573_v39 = vadd.f32 %v572_v10, %v571_v51 }
  0x46   : > { %v260_v34 = vadd.f32 0.5, %v1188_v5  ;;  %v261_v49 = vadd.f32 0.5, %v1191_v11  ;;  %v580_v33 = vadd.f32 %v579_v62, %v578_v54  ;;  %v587_v32 = vadd.f32 %v586_v12, %v585_v56 }
  0x47   : > { %v262_v30 = vadd.f32 0.5, %v1194_v13  ;;  %v367_v29 = vadd.f32 1.0, %v917_v63  ;;  %v594_v28 = vadd.f32 %v593_v14, %v592_v59  ;;  %v601_v44 = vadd.f32 %v600_v6, %v599_v60 }
  0x48   : > { %v263_v45 = vadd.f32 0.5, %v1199_v9  ;;  %v368_v1 = vadd.f32 1.0, %v919_v15  ;;  %v553_v2 = vrot.slane %v552_v19, 1  ;;  %v560_v41 = vrot.slane %v559_v20, 1 }
  0x49   : > { %v1209_v50 = vmul.f32 0.0625, %v256_v17  ;;  %v369_v51 = vadd.f32 1.0, %v921_v35  ;;  %v567_v8 = vrot.slane %v566_v37, 1  ;;  %v574_v10 = vrot.slane %v573_v39, 1 }
  0x4a   : > { %v1211_v55 = vmul.f32 0.0625, %v257_v18  ;;  %v370_v54 = vadd.f32 1.0, %v923_v31  ;;  %v581_v56 = vrot.slane %v580_v33, 1  ;;  %v588_v62 = vrot.slane %v587_v32, 1 }
  0x4b   : > { %v1213_v12 = vmul.f32 0.0625, %v258_v36  ;;  %924 = vrcp.f32 %v367_v29  ;;  %v595_v59 = vrot.slane %v594_v28, 1  ;;  %v602_v60 = vrot.slane %v601_v44, 1 }
  0x4c   : > { %v1215_v63 = vmul.f32 0.0625, %v259_v38  ;;  %926 = vrcp.f32 %v368_v1  ;;  %v554_v14 = vadd.f32 %v553_v2, %v552_v19  ;;  %v561_v6 = vadd.f32 %v560_v41, %v559_v20 }
  0x4d   : > { %v1217_v15 = vmul.f32 0.0625, %v260_v34  ;;  %928 = vrcp.f32 %v369_v51  ;;  %v568_v35 = vadd.f32 %v567_v8, %v566_v37  ;;  %v575_v17 = vadd.f32 %v574_v10, %v573_v39 }
  0x4e   : > { %v1219_v18 = vmul.f32 0.0625, %v261_v49  ;;  %930 = vrcp.f32 %v370_v54  ;;  %v582_v31 = vadd.f32 %v581_v56, %v580_v33  ;;  %v589_v47 = vadd.f32 %v588_v62, %v587_v32 }
  0x4f   : > { %v1221_v36 = vmul.f32 0.0625, %v262_v30  ;;  %v1223_v29 = vmul.f32 0.0625, %v263_v45  ;;  %v596_v43 = vadd.f32 %v595_v59, %v594_v28  ;;  %v603_v38 = vadd.f32 %v602_v60, %v601_v44 }
  0x50   : > { %v273_v1 = vfloor.f32 %v1209_v50  ;;  %v274_v41 = vfloor.f32 %v1211_v55  ;;  %v275_v34 = vfloor.f32 %v1213_v12  ;;  %v612_v19 = vcombine.low %v554_v14, %v561_v6 }
  0x51   : > { %v1404_v20 = vfloor.f32 %v1141_v61  ;;  %v276_v39 = vfloor.f32 %v1215_v63  ;;  %v277_v32 = vfloor.f32 %v1217_v15  ;;  %v613_v30 = vcombine.low %v568_v35, %v575_v17 }
  0x52   : > { %v1405_v33 = vcvt.s32.f32 %v1072_v16  ;;  %v1406_v49 = vcvt.s32.f32 %v1076_v21  ;;  %v278_v44 = vfloor.f32 %v1219_v18  ;;  %v614_v45 = vcombine.low %v582_v31, %v589_v47 }
  0x53   : > { %v236_v37 = vmul.f32 8.0, %v1404_v20  ;;  %v1407_v61 = vcvt.s32.f32 %v1079_v22  ;;  %v279_v50 = vfloor.f32 %v1221_v36  ;;  %v280_v51 = vfloor.f32 %v1223_v29 }
  0x54   : > { %v1235_v28 = vsub.f32 %v1405_v33, %v1161_v42  ;;  %v1240_v55 = vsub.f32 %v1406_v49, %v1163_v46  ;;  %v615_v16 = vcombine.low %v596_v43, %v603_v38  ;;  %v281_v42 = vmul.f32 16.0, %v273_v1 }
  0x55   : > { %v1246_v2 = vsub.f32 %v1407_v61, %v1165_v48  ;;  %v282_v8 = vmul.f32 16.0, %v274_v41  ;;  %v283_v10 = vmul.f32 16.0, %v275_v34  ;;  %932 = vrcp.f32 %v612_v19 }
  0x56   : > { %v1408_v21 = vcvt.s32.f32 %v1082_v23  ;;  %v284_v47 = vmul.f32 16.0, %v276_v39  ;;  %v285_v54 = vmul.f32 16.0, %v277_v32  ;;  %934 = vrcp.f32 %v613_v30 }
  0x57   : > { %v1409_v22 = vcvt.s32.f32 %v1085_v24  ;;  %v1410_v43 = vcvt.s32.f32 %v1088_v25  ;;  %v286_v62 = vmul.f32 16.0, %v278_v44  ;;  %936 = vrcp.f32 %v614_v45 }
  0x58   : > { %v1253_v46 = vsub.f32 %v1408_v21, %v1167_v52  ;;  %v1411_v23 = vcvt.s32.f32 %v1091_v26  ;;  %v287_v12 = vmul.f32 16.0, %v279_v50  ;;  %v288_v59 = vmul.f32 16.0, %v280_v51  ;;  %v925_v60 = vpop.eup %924 }
  0x59   : > { %v1258_v48 = vsub.f32 %v1409_v22, %v1169_v53  ;;  %v1263_v56 = vsub.f32 %v1410_v43, %v1171_v57  ;;  %938 = vrcp.f32 %v615_v16  ;;  %v1412_v24 = vcvt.s32.f32 %v1094_v27  ;;  %v927_v14 = vpop.eup %926  ;;  %v1414_v43 = vld [vmem:[#allocation3_spill] sm:$0xff] }
  0x5a   : > { %v1268_v52 = vsub.f32 %v1411_v23, %v1173_v58  ;;  %v289_v63 = vsub.f32 %v1176_v3, %v281_v42  ;;  %v290_v25 = vsub.f32 %v1179_v0, %v282_v8  ;;  %v291_v57 = vsub.f32 %v1182_v4, %v283_v10  ;;  %v929_v58 = vpop.eup %928  ;;  %v1415_v23 = vld [vmem:[#allocation4_spill] sm:$0xff] }
  0x5b   : > { %v1272_v53 = vsub.f32 %v1412_v24, %v236_v37  ;;  %v292_v6 = vsub.f32 %v1185_v7, %v284_v47  ;;  %v293_v26 = vsub.f32 %v1188_v5, %v285_v54  ;;  %vm297_vm1 = vcmp.lt.f32.partialorder %v1235_v28, 0.5  ;;  %v931_v3 = vpop.eup %930  ;;  %v1413_v54 = vld [vmem:[#allocation2_spill] sm:$0xff] }
  0x5c   : > { %vm298_vm2 = vcmp.lt.f32.partialorder %v1240_v55, 0.5  ;;  %v294_v27 = vsub.f32 %v1191_v11, %v286_v62  ;;  %vm299_vm3 = vcmp.lt.f32.partialorder %v1246_v2, 0.5  ;;  %vm300_vm4 = vcmp.lt.f32.partialorder %v1253_v46, 0.5 }
  0x5d   : > { %vm301_vm5 = vcmp.lt.f32.partialorder %v1258_v48, 0.5  ;;  %v295_v0 = vsub.f32 %v1194_v13, %v287_v12  ;;  %v296_v4 = vsub.f32 %v1199_v9, %v288_v59  ;;  %vm302_vm6 = vcmp.lt.f32.partialorder %v1263_v56, 0.5 }
  0x5e   : > { %vm303_vm7 = vcmp.lt.f32.partialorder %v1268_v52, 0.5  ;;  %vm304_vm8 = vcmp.lt.f32.partialorder %v1272_v53, 0.5  ;;  %v305_v7 = vsel %vm297_vm1, %v289_v63, %v273_v1  ;;  %v306_v5 = vsel %vm298_vm2, %v290_v25, %v274_v41 }
  0x5f   : > { %v307_v11 = vsel %vm299_vm3, %v291_v57, %v275_v34  ;;  %v308_v15 = vsel %vm300_vm4, %v292_v6, %v276_v39  ;;  %v309_v35 = vsel %vm301_vm5, %v293_v26, %v277_v32  ;;  %v379_v17 = vmul.f32 2.0, %v925_v60 }
  0x60   : > { %v310_v18 = vsel %vm302_vm6, %v294_v27, %v278_v44  ;;  %v380_v31 = vmul.f32 2.0, %v927_v14  ;;  %v381_v36 = vmul.f32 2.0, %v929_v58  ;;  %v382_v29 = vmul.f32 2.0, %v931_v3 }
  0x61   : > { %v311_v38 = vsel %vm303_vm7, %v295_v0, %v279_v50  ;;  %v312_v13 = vsel %vm304_vm8, %v296_v4, %v280_v51  ;;  %v854_v9 = vadd.f32 -0.5, %v379_v17  ;;  %v395_v20 = vcombine.low %v305_v7, %v306_v5 }
  0x62   : > { %v933_v19 = vpop.eup %932  ;;  %v396_v37 = vcombine.low %v307_v11, %v308_v15  ;;  %v397_v30 = vcombine.low %v309_v35, %v310_v18  ;;  %v855_v45 = vadd.f32 -0.5, %v380_v31  ;;  %v856_v1 = vadd.f32 -0.5, %v381_v36 }
  0x63   : > { %v935_v33 = vpop.eup %934  ;;  %v857_v41 = vadd.f32 -0.5, %v382_v29  ;;  %v398_v34 = vcombine.low %v311_v38, %v312_v13  ;;  %vm314_vm9 = vcmp.lt.f32.partialorder %v1235_v28, 2.5  ;;  %vm315_vm10 = vcmp.lt.f32.partialorder %v1240_v55, 2.5 }
  0x64   : > { %v937_v39 = vpop.eup %936  ;;  %vm316_vm11 = vcmp.lt.f32.partialorder %v1246_v2, 2.5  ;;  %vm317_vm12 = vcmp.lt.f32.partialorder %v1253_v46, 2.5  ;;  %vm318_vm13 = vcmp.lt.f32.partialorder %v1258_v48, 2.5  ;;  %vm319_vm14 = vcmp.lt.f32.partialorder %v1263_v56, 2.5 }
  0x65   : > { %vm320_vm15 = vcmp.lt.f32.partialorder %v1268_v52, 2.5  ;;  %vm321_vm0 = vcmp.lt.f32.partialorder %v1272_v53, 2.5  ;;  %v403_v44 = vadd.f32 %v854_v9, %v395_v20  ;;  %v411_v61 = vmul.f32 %v379_v17, %v379_v17 }
  0x66   : > { %v939_v32 = vpop.eup %938  ;;  %v412_v50 = vmul.f32 %v380_v31, %v380_v31  ;;  %v413_v51 = vmul.f32 %v381_v36, %v381_v36  ;;  %v404_v16 = vadd.f32 %v855_v45, %v396_v37  ;;  %v405_v42 = vadd.f32 %v856_v1, %v397_v30 }
  0x67   : > { %v406_v8 = vadd.f32 %v857_v41, %v398_v34  ;;  %v414_v10 = vmul.f32 %v382_v29, %v382_v29  ;;  %vm636_vm1 = vcmp.lt.f32.partialorder %v1235_v28, 3.5  ;;  %vm638_vm2 = vcmp.lt.f32.partialorder %v1246_v2, 3.5 }
  0x68   : > { %vm640_vm3 = vcmp.lt.f32.partialorder %v1258_v48, 3.5  ;;  %vm642_vm4 = vcmp.lt.f32.partialorder %v1268_v52, 3.5  ;;  %v621_v47 = vmul.f32 %v933_v19, %v1113_v40  ;;  %v623_v22 = vmul.f32 %v935_v33, %v1413_v54 }
  0x69   : > { %v625_v62 = vmul.f32 %v937_v39, %v1414_v43  ;;  %v627_v12 = vmul.f32 %v939_v32, %v1415_v23  ;;  %vm628_vm5 = vcmp.lt.f32.partialorder %v1235_v28, 1.5  ;;  %vm629_vm6 = vcmp.lt.f32.partialorder %v1240_v55, 1.5 }
  0x6a   : > { %vm630_vm7 = vcmp.lt.f32.partialorder %v1246_v2, 1.5  ;;  %vm631_vm8 = vcmp.lt.f32.partialorder %v1253_v46, 1.5  ;;  %v407_v3 = vmul.f32 8.0, %v403_v44  ;;  %v408_v0 = vmul.f32 8.0, %v404_v16 }
  0x6b   : > { %v409_v4 = vmul.f32 8.0, %v405_v42  ;;  %v410_v7 = vmul.f32 8.0, %v406_v8  ;;  %v676_v17 = vcombine.high %v621_v47, %v621_v47  ;;  %v677_v18 = vcombine.high %v623_v22, %v623_v22 }
  0x6c   : > { %v678_v31 = vcombine.high %v625_v62, %v625_v62  ;;  %v679_v36 = vcombine.high %v627_v12, %v627_v12  ;;  %v712_v9 = vcombine.high %v407_v3, %v407_v3  ;;  %v713_v20 = vcombine.high %v408_v0, %v408_v0 }
  0x6d   : > { %v714_v37 = vcombine.high %v409_v4, %v409_v4  ;;  %v715_v30 = vcombine.high %v410_v7, %v410_v7 }
  0x8b   : > { %v341_v49 = vpop.permute.xlu0 %340 }
  0x90   : > { %v345_v21 = vpop.permute.xlu0 %344 }
  0x91   : > { %v347_v59 = vsel %vm314_vm9, %v341_v49, %v345_v21  ;;  %v348_v40 = vsel %vm315_vm10, %v341_v49, %v345_v21  ;;  %v349_v60 = vsel %vm316_vm11, %v341_v49, %v345_v21  ;;  %v350_v24 = vsel %vm317_vm12, %v341_v49, %v345_v21 }
  0x92   : > { %v351_v63 = vsel %vm318_vm13, %v341_v49, %v345_v21  ;;  %v352_v25 = vsel %vm319_vm14, %v341_v49, %v345_v21  ;;  %v353_v57 = vsel %vm320_vm15, %v341_v49, %v345_v21  ;;  %v354_v14 = vsel %vm321_vm0, %v341_v49, %v345_v21 }
  0x93   : > { %vm632_vm9 = vcmp.lt.f32.partialorder %v1258_v48, 1.5  ;;  %vm633_vm10 = vcmp.lt.f32.partialorder %v1263_v56, 1.5  ;;  %vm634_vm11 = vcmp.lt.f32.partialorder %v1268_v52, 1.5  ;;  %vm635_vm12 = vcmp.lt.f32.partialorder %v1272_v53, 1.5 }
  0x94   : > { %v423_v6 = vcombine.low %v347_v59, %v348_v40  ;;  %v424_v26 = vcombine.low %v349_v60, %v350_v24  ;;  %v425_v58 = vcombine.low %v351_v63, %v352_v25  ;;  %v426_v27 = vcombine.low %v353_v57, %v354_v14 }
  0x95   : > { %vm1416_vm13 = vcmp.lt.f32.partialorder %v1240_v55, 3.5  ;;  %vm1417_vm14 = vcmp.lt.f32.partialorder %v1253_v46, 3.5  ;;  %vm1418_vm15 = vcmp.lt.f32.partialorder %v1263_v56, 3.5  ;;  %vm1419_vm0 = vcmp.lt.f32.partialorder %v1272_v53, 3.5 }
  0x96   : > { %v431_v5 = vmul.f32 %v423_v6, %v411_v61  ;;  %v432_v11 = vmul.f32 %v424_v26, %v412_v50  ;;  %v433_v15 = vmul.f32 %v425_v58, %v413_v51  ;;  %v434_v35 = vmul.f32 %v426_v27, %v414_v10 }
  0x98   : > { %v435_v29 = vmul.f32 8.0, %v431_v5  ;;  %v436_v38 = vmul.f32 8.0, %v432_v11  ;;  %v437_v13 = vmul.f32 8.0, %v433_v15  ;;  %v438_v19 = vmul.f32 8.0, %v434_v35 }
  0x9a   : > { %v664_v33 = vcombine.high %v435_v29, %v435_v29  ;;  %v665_v49 = vcombine.high %v436_v38, %v436_v38  ;;  %v666_v45 = vcombine.high %v437_v13, %v437_v13  ;;  %v667_v1 = vcombine.high %v438_v19, %v438_v19 }
  0x9b   : > { %v684_v41 = vsel %vm636_vm1, %v435_v29, %v621_v47  ;;  %v686_v34 = vsel %vm638_vm2, %v436_v38, %v623_v22  ;;  %v688_v39 = vsel %vm640_vm3, %v437_v13, %v625_v62  ;;  %v690_v32 = vsel %vm642_vm4, %v438_v19, %v627_v12 }
  0x9c   : > { %v685_v44 = vsel %vm1416_vm13, %v664_v33, %v676_v17  ;;  %v687_v61 = vsel %vm1417_vm14, %v665_v49, %v677_v18  ;;  %v689_v50 = vsel %vm1418_vm15, %v666_v45, %v678_v31  ;;  %v691_v51 = vsel %vm1419_vm0, %v667_v1, %v679_v36 }
  0x9d   : > { %v720_v16 = vsel %vm628_vm5, %v407_v3, %v684_v41  ;;  %v721_v42 = vsel %vm629_vm6, %v712_v9, %v685_v44  ;;  %v722_v8 = vsel %vm630_vm7, %v408_v0, %v686_v34  ;;  %v723_v10 = vsel %vm631_vm8, %v713_v20, %v687_v61 }
  0x9e   : > { %v724_v21 = vsel %vm632_vm9, %v409_v4, %v688_v39  ;;  %v725_v28 = vsel %vm633_vm10, %v714_v37, %v689_v50  ;;  %v726_v55 = vsel %vm634_vm11, %v410_v7, %v690_v32  ;;  %v727_v2 = vsel %vm635_vm12, %v715_v30, %v691_v51 }
  0x9f   : > { %v736_v47 = vcombine.low %v720_v16, %v721_v42  ;;  %v737_v46 = vcombine.low %v722_v8, %v723_v10  ;;  %v738_v54 = vcombine.low %v724_v21, %v725_v28  ;;  %v739_v22 = vcombine.low %v726_v55, %v727_v2 }
  0xa1   : > { %744 = vst [vmem:[%s181_s29] sm:$0x77] %v736_v47  ;;  %745 = vst [vmem:[%s181_s29 + $0x8] sm:$0x77] %v737_v46 }
  0xa2   : > { %746 = vst [vmem:[%s181_s29 + $0x10] sm:$0x77] %v738_v54  ;;  %747 = vst [vmem:[%s181_s29 + $0x18] sm:$0x77] %v739_v22 }
  0xa3 PF: > { %s12_s13 = sadd.s32 1, %s978_s13   ;;  %s1420_s9 = smov %s970_s11 }
  0xa4   : > { %p9_p7 = scmp.ge.s32.totalorder %s12_s13, 6   ;;  %s1421_s10 = smov %s974_s12 }
  0xa5   : > { %s1422_s11 = smov %s1425_s14  ;;  %s1423_s12 = smov %s1429_s15 }
  0xa6   :  { %11 = sbr.rel (!%p9_p7) target bundleno = 3 (0x3), region = 58 }

</bundles_post_ra>
